<compile_context>
chip_gen: v6e
topology: v6e:2x2x1
jax: 0.10.0
libtpu: 0.0.40
codegen_flags: <defaults>
</compile_context>

<pallas_src>
import functools
from typing import NamedTuple

import jax
import jax.numpy as jnp
from jax.experimental import pallas as pl
from jax.experimental.pallas import tpu as pltpu


def _round_up(x, m):
    return (x + m - 1) // m * m


def _chip_defaults():
    """Per-generation tile defaults + VMEM cap (bytes)."""
    kind = ""
    try:
        kind = jax.devices()[0].device_kind.lower()
    except Exception:
        pass
    if "v7" in kind:
        # 64 MiB physical VMEM, ~310 FLOPs/byte roofline -> moderate tm.
        return dict(tm=512, tff=512, vmem_cap=56 << 20, prefer_two_row_tiles=True)
    if "v6" in kind:
        # 128 MiB VMEM, ~650 FLOPs/byte roofline -> large row tile.
        return dict(tm=1024, tff=512, vmem_cap=100 << 20, prefer_two_row_tiles=False)
    if "v5e" in kind or "v5 lite" in kind or "v5lite" in kind:
        # ~240 FLOPs/byte roofline; keep tm=256 but raise scoped VMEM limit.
        return dict(tm=256, tff=512, vmem_cap=100 << 20, prefer_two_row_tiles=False)
    # Unknown / other (v4, v5p, emulator): conservative middle ground.
    return dict(tm=512, tff=512, vmem_cap=56 << 20, prefer_two_row_tiles=False)


def _pick_tff(d_ff_p, tff_req):
    """Largest multiple of 128 <= tff_req that divides d_ff_p (no wasted k step)."""
    tff_req = max(128, min(tff_req, d_ff_p))
    best = 128
    for t in range(128, tff_req + 1, 128):
        if d_ff_p % t == 0:
            best = t
    return best


def _vmem_working_set(tm, tff, d_model_p, c_isz, o_isz, use_acc):
    """Double-buffered per-step VMEM footprint (bytes)."""
    ws = 0
    ws += 2 * tm * d_model_p * c_isz            # x tile
    ws += 2 * d_model_p * tff * c_isz           # w1 slab
    ws += 2 * tff * d_model_p * c_isz           # w2 slab
    ws += 2 * 8 * tff * 4 + 2 * 8 * d_model_p * 4   # biases (sublane-padded)
    ws += 2 * tm * d_model_p * o_isz            # output tile
    if use_acc:
        ws += tm * d_model_p * 4                # f32 accumulator scratch
    return ws


class FFNParams(NamedTuple):
    w1_blk: jax.Array   # (n_k, d_model_p, tff) compute dtype, contiguous per-k slab
    b1: jax.Array       # (1, d_ff_p) f32
    w2: jax.Array       # (d_ff_p, d_model_p) compute dtype
    b2: jax.Array       # (1, d_model_p) f32
    d_model: int
    d_ff: int
    tff: int


def prepare_ffn_params(w1, b1, w2, b2, *, tff=None, compute_dtype=jnp.bfloat16):
    """Pad / cast / re-layout FFN weights ONCE at parameter-load time.

    w1: (d_model, d_ff)  (= torch w_1.weight.T),   b1: (d_ff,)
    w2: (d_ff, d_model)  (= torch w_2.weight.T),   b2: (d_model,)
    """
    d_model, d_ff = w1.shape
    assert w2.shape == (d_ff, d_model)
    d_model_p = _round_up(d_model, 128)
    d_ff_p = _round_up(d_ff, 128)          # pad d_ff only to 128
    if tff is None:
        tff = _chip_defaults()["tff"]
    tff = _pick_tff(d_ff_p, tff)           # divisor of d_ff_p -> no zero k step
    n_k = d_ff_p // tff

    w1p = jnp.pad(w1, ((0, d_model_p - d_model), (0, d_ff_p - d_ff))).astype(compute_dtype)
    # Block the d_ff axis so slab k is a single contiguous HBM region.
    w1_blk = w1p.reshape(d_model_p, n_k, tff).transpose(1, 0, 2)
    w2p = jnp.pad(w2, ((0, d_ff_p - d_ff), (0, d_model_p - d_model))).astype(compute_dtype)
    b1p = jnp.pad(b1.astype(jnp.float32), (0, d_ff_p - d_ff)).reshape(1, d_ff_p)
    b2p = jnp.pad(b2.astype(jnp.float32), (0, d_model_p - d_model)).reshape(1, d_model_p)

    return FFNParams(w1_blk=w1_blk, b1=b1p, w2=w2p, b2=b2p,
                     d_model=d_model, d_ff=d_ff, tff=tff)


def _ffn_kernel(x_ref, w1_ref, b1_ref, w2_ref, b2_ref, o_ref, *acc):
    # x_ref:   (tm, d_model_p)   compute dtype
    # w1_ref:  (d_model_p, tff)  compute dtype (k-th contiguous slab)
    # b1_ref:  (1, tff)          f32
    # w2_ref:  (tff, d_model_p)  compute dtype (k-th slab)
    # b2_ref:  (1, d_model_p)    f32
    # o_ref:   (tm, d_model_p)   output (resident across k)
    # acc:     optional (tm, d_model_p) f32 scratch; when out dtype is f32 we
    #          accumulate directly into o_ref and save the scratch VMEM.
    acc_ref = acc[0] if acc else o_ref
    k = pl.program_id(1)

    # First matmul on the MXU, f32 accumulation; bias + ReLU stay f32 (VPU).
    h = jnp.dot(x_ref[...], w1_ref[...], preferred_element_type=jnp.float32)
    h = jnp.maximum(h + b1_ref[...], 0.0)
    # dropout == identity (inference).  TODO(synk): training-mode dropout.

    partial_out = jnp.dot(h.astype(w2_ref.dtype), w2_ref[...],
                          preferred_element_type=jnp.float32)

    @pl.when(k == 0)
    def _():
        acc_ref[...] = partial_out          # direct store: no zero-fill pass

    @pl.when(k > 0)
    def _():
        acc_ref[...] += partial_out

    @pl.when(k == pl.num_programs(1) - 1)
    def _():
        o_ref[...] = (acc_ref[...] + b2_ref[...]).astype(o_ref.dtype)


@functools.partial(jax.jit, static_argnames=("tm", "tff", "vmem_limit_bytes"))
def _ffn_pallas(x, w1_blk, b1p, w2p, b2p, *, tm, tff, vmem_limit_bytes):
    batch, seq, d_model = x.shape
    n_k, d_model_p, _ = w1_blk.shape
    d_ff_p = n_k * tff
    compute_dtype = w1_blk.dtype
    out_dtype = x.dtype
    c_isz = jnp.dtype(compute_dtype).itemsize
    o_isz = jnp.dtype(out_dtype).itemsize

    M = batch * seq
    M_pad = _round_up(M, tm)
    n_row_tiles = M_pad // tm

    x2d = x.reshape(M, d_model)
    if M_pad != M or d_model_p != d_model:
        x2d = jnp.pad(x2d, ((0, M_pad - M), (0, d_model_p - d_model)))
    if x2d.dtype != compute_dtype:
        x2d = x2d.astype(compute_dtype)

    # f32 output -> accumulate directly into the resident output block.
    use_acc = out_dtype != jnp.float32

    cost = pl.CostEstimate(
        flops=4 * M_pad * d_ff_p * d_model_p,       # two matmuls
        transcendentals=0,
        bytes_accessed=(M_pad * d_model_p * c_isz                     # x
                        + n_row_tiles * d_model_p * d_ff_p * c_isz    # w1 per row tile
                        + n_row_tiles * d_ff_p * d_model_p * c_isz    # w2 per row tile
                        + n_row_tiles * (d_ff_p + d_model_p) * 4      # biases
                        + M_pad * d_model_p * o_isz))                 # output

    scratch = [pltpu.VMEM((tm, d_model_p), jnp.float32)] if use_acc else []

    out2d = pl.pallas_call(
        _ffn_kernel,
        out_shape=jax.ShapeDtypeStruct((M_pad, d_model_p), out_dtype),
        grid_spec=pltpu.PrefetchScalarGridSpec(
            num_scalar_prefetch=0,
            grid=(n_row_tiles, n_k),
            in_specs=[
                pl.BlockSpec((tm, d_model_p), lambda i, k: (i, 0)),        # x rows
                pl.BlockSpec((None, d_model_p, tff), lambda i, k: (k, 0, 0)),  # w1 slab (contiguous)
                pl.BlockSpec((1, tff), lambda i, k: (0, k)),               # b1 slab
                pl.BlockSpec((tff, d_model_p), lambda i, k: (k, 0)),       # w2 slab
                pl.BlockSpec((1, d_model_p), lambda i, k: (0, 0)),         # b2
            ],
            out_specs=pl.BlockSpec((tm, d_model_p), lambda i, k: (i, 0)),
            scratch_shapes=scratch,
        ),
        compiler_params=pltpu.CompilerParams(
            dimension_semantics=("parallel", "arbitrary"),
            vmem_limit_bytes=vmem_limit_bytes),
        cost_estimate=cost,
    )(x2d, w1_blk, b1p, w2p, b2p)

    out = out2d
    if M_pad != M or d_model_p != d_model:
        out = out[:M, :d_model]
    return out.reshape(batch, seq, d_model)


def positionwise_feed_forward(x, params: FFNParams, *, tm=None):
    """x: (batch, seq, d_model); params from prepare_ffn_params.  Returns same shape."""
    batch, seq, d_model = x.shape
    assert d_model == params.d_model
    defaults = _chip_defaults()
    tm = tm or defaults["tm"]

    n_k, d_model_p, tff = params.w1_blk.shape
    c_isz = jnp.dtype(params.w1_blk.dtype).itemsize
    o_isz = jnp.dtype(x.dtype).itemsize
    use_acc = x.dtype != jnp.float32

    M = batch * seq
    # Row tile: multiple of 16 (bf16 sublane packing), clamped for small M.
    tm_eff = max(16, min(tm, _round_up(M, 16)))

    # v7x: prefer >=2 row tiles so the "parallel" M axis can use both TensorCores.
    if (defaults["prefer_two_row_tiles"] and tm_eff >= 256
            and _round_up(M, tm_eff) // tm_eff == 1 and M > 256):
        tm_eff = max(128, ((tm_eff // 2) // 16) * 16)

    # Shrink tm until the double-buffered working set fits the per-chip VMEM cap.
    cap = defaults["vmem_cap"]
    while (_vmem_working_set(tm_eff, tff, d_model_p, c_isz, o_isz, use_acc)
           > int(cap * 0.9) and tm_eff > 128):
        tm_eff = max(128, ((tm_eff // 2) // 16) * 16)

    ws = _vmem_working_set(tm_eff, tff, d_model_p, c_isz, o_isz, use_acc)
    vmem_limit = int(min(cap, max(32 << 20, int(ws * 1.25) + (2 << 20))))

    return _ffn_pallas(x, params.w1_blk, params.b1, params.w2, params.b2,
                       tm=tm_eff, tff=tff, vmem_limit_bytes=vmem_limit)


def _reference(x, w1, b1, w2, b2):
    h = jnp.maximum(x @ w1 + b1, 0.0)
    return h @ w2 + b2


if __name__ == "__main__":
    batch, seq, d_model, d_ff = 2, 8, 32, 64

    key = jax.random.PRNGKey(0)
    kx, kw1, kb1, kw2, kb2 = jax.random.split(key, 5)

    x = jax.random.normal(kx, (batch, seq, d_model), dtype=jnp.float32)
    # Deterministic "Linear"-style init (scaled uniform), stored pre-transposed.
    w1 = jax.random.uniform(kw1, (d_model, d_ff), jnp.float32,
                            minval=-1.0, maxval=1.0) / jnp.sqrt(d_model)
    b1 = jax.random.uniform(kb1, (d_ff,), jnp.float32,
                            minval=-1.0, maxval=1.0) / jnp.sqrt(d_model)
    w2 = jax.random.uniform(kw2, (d_ff, d_model), jnp.float32,
                            minval=-1.0, maxval=1.0) / jnp.sqrt(d_ff)
    b2 = jax.random.uniform(kb2, (d_model,), jnp.float32,
                            minval=-1.0, maxval=1.0) / jnp.sqrt(d_ff)

    ref = _reference(x, w1, b1, w2, b2)

    # f32 weights + f32 activations (accumulates directly into the output block).
    params_f32 = prepare_ffn_params(w1, b1, w2, b2, compute_dtype=jnp.float32)
    out_f32 = jax.block_until_ready(positionwise_feed_forward(x, params_f32))
    assert out_f32.shape == (batch, seq, d_model)
    assert jnp.allclose(out_f32, ref, atol=1e-5, rtol=1e-5), "f32 mismatch vs reference"

    # bf16 weights (default fast path on v5e/v6e/v7x MXU), f32 activations.
    params_bf16 = prepare_ffn_params(w1, b1, w2, b2, compute_dtype=jnp.bfloat16)
    out_bf16 = jax.block_until_ready(positionwise_feed_forward(x, params_bf16))
    assert out_bf16.shape == (batch, seq, d_model)
    assert jnp.allclose(out_bf16, ref, atol=5e-2, rtol=5e-2), "bf16 mismatch vs reference"

    # bf16 activations too (exercises the f32-accumulator-scratch path, bf16 output).
    out_bf16_act = jax.block_until_ready(
        positionwise_feed_forward(x.astype(jnp.bfloat16), params_bf16))
    assert out_bf16_act.shape == (batch, seq, d_model)
    assert jnp.allclose(out_bf16_act.astype(jnp.float32), ref,
                        atol=2e-1, rtol=2e-1), "bf16-activation mismatch vs reference"

    print("KERNEL_OK")
</pallas_src>

<mosaic_0001>
module attributes {stable_mosaic.version = 11 : i64} {
  func.func @_ffn_kernel(%arg0: i32, %arg1: i32, %arg2: memref<16x128xf32, #tpu.memory_space<vmem>>, %arg3: memref<1x128x128xf32, #tpu.memory_space<vmem>>, %arg4: memref<1x128xf32, #tpu.memory_space<vmem>>, %arg5: memref<128x128xf32, #tpu.memory_space<vmem>>, %arg6: memref<1x128xf32, #tpu.memory_space<vmem>>, %arg7: memref<16x128xf32, #tpu.memory_space<vmem>>) attributes {dimension_semantics = [#tpu.dimension_semantics<parallel>, #tpu.dimension_semantics<arbitrary>], iteration_bounds = array<i64: 1, 1>, scalar_prefetch = 0 : i64, scratch_operands = 0 : i64, tpu.core_type = #tpu.core_type<tc>, window_params = [{transform_indices = @transform_0, window_bounds = array<i64: 16, 128>}, {transform_indices = @transform_1, window_bounds = array<i64: 1, 128, 128>}, {transform_indices = @transform_2, window_bounds = array<i64: 1, 128>}, {transform_indices = @transform_3, window_bounds = array<i64: 128, 128>}, {pipeline_mode = #tpu.pipeline_mode<synchronous>, transform_indices = @transform_4, window_bounds = array<i64: 1, 128>}, {transform_indices = @transform_5, window_bounds = array<i64: 16, 128>}]} {
    %c0 = arith.constant 0 : index
    %c0_0 = arith.constant 0 : index
    %0 = vector.load %arg2[%c0, %c0_0] : memref<16x128xf32, #tpu.memory_space<vmem>>, vector<16x128xf32>
    %c0_1 = arith.constant 0 : index
    %c0_2 = arith.constant 0 : index
    %c0_3 = arith.constant 0 : index
    %1 = vector.load %arg3[%c0_1, %c0_2, %c0_3] : memref<1x128x128xf32, #tpu.memory_space<vmem>>, vector<1x128x128xf32>
    %2 = vector.shape_cast %1 : vector<1x128x128xf32> to vector<128x128xf32>
    %cst = arith.constant dense<0.000000e+00> : vector<16x128xf32>
    %3 = tpu.matmul %0, %2, %cst {dimension_numbers = #tpu.dot_dimension_numbers<[1], [0], [0], [1], [0, 0, 1, 1], [], []>} : vector<16x128xf32>, vector<128x128xf32>, vector<16x128xf32> -> vector<16x128xf32>
    %c0_4 = arith.constant 0 : index
    %c0_5 = arith.constant 0 : index
    %4 = vector.load %arg4[%c0_4, %c0_5] : memref<1x128xf32, #tpu.memory_space<vmem>>, vector<1x128xf32>
    %5 = vector.broadcast %4 : vector<1x128xf32> to vector<16x128xf32>
    %6 = arith.addf %3, %5 : vector<16x128xf32>
    %cst_6 = arith.constant 0.000000e+00 : f32
    %7 = vector.broadcast %cst_6 : f32 to vector<16x128xf32>
    %8 = arith.maximumf %6, %7 : vector<16x128xf32>
    %c0_7 = arith.constant 0 : index
    %c0_8 = arith.constant 0 : index
    %9 = vector.load %arg5[%c0_7, %c0_8] : memref<128x128xf32, #tpu.memory_space<vmem>>, vector<128x128xf32>
    %cst_9 = arith.constant dense<0.000000e+00> : vector<16x128xf32>
    %10 = tpu.matmul %8, %9, %cst_9 {dimension_numbers = #tpu.dot_dimension_numbers<[1], [0], [0], [1], [0, 0, 1, 1], [], []>} : vector<16x128xf32>, vector<128x128xf32>, vector<16x128xf32> -> vector<16x128xf32>
    %c0_i32 = arith.constant 0 : i32
    %11 = arith.cmpi eq, %arg1, %c0_i32 : i32
    %12 = arith.extui %11 : i1 to i32
    %c0_i32_10 = arith.constant 0 : i32
    %13 = arith.cmpi ne, %12, %c0_i32_10 : i32
    scf.if %13 {
      %c0_15 = arith.constant 0 : index
      %c0_16 = arith.constant 0 : index
      %20 = vector.load %arg7[%c0_15, %c0_16] : memref<16x128xf32, #tpu.memory_space<vmem>>, vector<16x128xf32>
      tpu.vector_store %arg7[%c0_15, %c0_16], %10 {strides = array<i32>} : memref<16x128xf32, #tpu.memory_space<vmem>>, vector<16x128xf32>,
    } else {
    }
    %c0_i32_11 = arith.constant 0 : i32
    %14 = arith.cmpi sgt, %arg1, %c0_i32_11 : i32
    %15 = arith.extui %14 : i1 to i32
    %c0_i32_12 = arith.constant 0 : i32
    %16 = arith.cmpi ne, %15, %c0_i32_12 : i32
    scf.if %16 {
      %c0_15 = arith.constant 0 : index
      %c0_16 = arith.constant 0 : index
      %20 = vector.load %arg7[%c0_15, %c0_16] : memref<16x128xf32, #tpu.memory_space<vmem>>, vector<16x128xf32>
      %21 = arith.addf %20, %10 : vector<16x128xf32>
      %c0_17 = arith.constant 0 : index
      %c0_18 = arith.constant 0 : index
      %22 = vector.load %arg7[%c0_17, %c0_18] : memref<16x128xf32, #tpu.memory_space<vmem>>, vector<16x128xf32>
      tpu.vector_store %arg7[%c0_17, %c0_18], %21 {strides = array<i32>} : memref<16x128xf32, #tpu.memory_space<vmem>>, vector<16x128xf32>,
    } else {
    }
    %c0_i32_13 = arith.constant 0 : i32
    %17 = arith.cmpi eq, %arg1, %c0_i32_13 : i32
    %18 = arith.extui %17 : i1 to i32
    %c0_i32_14 = arith.constant 0 : i32
    %19 = arith.cmpi ne, %18, %c0_i32_14 : i32
    scf.if %19 {
      %c0_15 = arith.constant 0 : index
      %c0_16 = arith.constant 0 : index
      %20 = vector.load %arg7[%c0_15, %c0_16] : memref<16x128xf32, #tpu.memory_space<vmem>>, vector<16x128xf32>
      %c0_17 = arith.constant 0 : index
      %c0_18 = arith.constant 0 : index
      %21 = vector.load %arg6[%c0_17, %c0_18] : memref<1x128xf32, #tpu.memory_space<vmem>>, vector<1x128xf32>
      %22 = vector.broadcast %21 : vector<1x128xf32> to vector<16x128xf32>
      %23 = arith.addf %20, %22 : vector<16x128xf32>
      %c0_19 = arith.constant 0 : index
      %c0_20 = arith.constant 0 : index
      %24 = vector.load %arg7[%c0_19, %c0_20] : memref<16x128xf32, #tpu.memory_space<vmem>>, vector<16x128xf32>
      tpu.vector_store %arg7[%c0_19, %c0_20], %23 {strides = array<i32>} : memref<16x128xf32, #tpu.memory_space<vmem>>, vector<16x128xf32>,
    } else {
    }
    return
  }
  func.func @transform_0(%arg0: i32, %arg1: i32) -> (i32, i32) {
    %c0_i32 = arith.constant 0 : i32
    %c0_i32_0 = arith.constant 0 : i32
    return %arg0, %c0_i32 : i32, i32
  }
  func.func @transform_1(%arg0: i32, %arg1: i32) -> (i32, i32, i32) {
    %c0_i32 = arith.constant 0 : i32
    %c0_i32_0 = arith.constant 0 : i32
    %c0_i32_1 = arith.constant 0 : i32
    return %arg1, %c0_i32, %c0_i32_0 : i32, i32, i32
  }
  func.func @transform_2(%arg0: i32, %arg1: i32) -> (i32, i32) {
    %c0_i32 = arith.constant 0 : i32
    %c0_i32_0 = arith.constant 0 : i32
    return %c0_i32, %arg1 : i32, i32
  }
  func.func @transform_3(%arg0: i32, %arg1: i32) -> (i32, i32) {
    %c0_i32 = arith.constant 0 : i32
    %c0_i32_0 = arith.constant 0 : i32
    return %arg1, %c0_i32 : i32, i32
  }
  func.func @transform_4(%arg0: i32, %arg1: i32) -> (i32, i32) {
    %c0_i32 = arith.constant 0 : i32
    %c0_i32_0 = arith.constant 0 : i32
    %c0_i32_1 = arith.constant 0 : i32
    return %c0_i32, %c0_i32_0 : i32, i32
  }
  func.func @transform_5(%arg0: i32, %arg1: i32) -> (i32, i32) {
    %c0_i32 = arith.constant 0 : i32
    %c0_i32_0 = arith.constant 0 : i32
    return %arg0, %c0_i32 : i32, i32
  }
}

</mosaic_0001>

<bundles_post_ra>
// kernel: _ffn_pallas.1
= control target key start
LH: loop header
LB: loop body
LE: loop exit
PB: predicated region body
PF: predicated region fallthrough
CT: control target
= control target key end

     0   :  { %10 = vsyncpa [#allocation3], 0  ;;  %s493_s0 = inlined_call_operand.vmem [shape: f32[16,128], index: 0, kind: input, shape index: {}]   ;;  %s494_s1 = inlined_call_operand.hbm [shape: f32[1,128,128], index: 1, kind: input, shape index: {}]   ;;  %s495_s2 = inlined_call_operand.vmem [shape: f32[1,128], index: 2, kind: input, shape index: {}]   ;;  %s496_s3 = inlined_call_operand.hbm [shape: f32[128,128], index: 3, kind: input, shape index: {}]   ;;  %s497_s4 = inlined_call_operand.vmem [shape: f32[1,128], index: 4, kind: input, shape index: {}]   ;;  %s498_s5 = inlined_call_operand.vmem [shape: f32[16,128], index: 5, kind: output, shape index: {}]  }
   0x1   :  { %11 = vsyncpa [#allocation5], 0  ;;  %s435_s18 = smov [#allocation2]  }
   0x2   :  { %s19_s19 = sshll.u32 %s435_s18, 4  ;;  %s20_s19 = int_to_ptr.vmem [resolvable:$true] %s19_s19 }
   0x3   :  { %s399_s20 = scalar_lea.vmem %s20_s19, 2048  ;;  %p404_p1 = scmp.lt.s32.totalorder %s20_s19, %s20_s19 }
   0x4   :  { %p400_p0 = scmp.ne.s32.totalorder %s20_s19, %s399_s20  ;;  %p405_p2 = scmp.lt.s32.totalorder %s399_s20, %s399_s20 }
   0x6   :  { %p406_p3 = por %p405_p2, %p404_p1 }
   0x8   :  { %p407_p4 = pnand %p406_p3, %p400_p0 }
   0xa   :  { %410 = shalt.err (!%p407_p4)
}
   0xb   :  { %s436_s21 = smov 128   ;;  %s437_s22 = smov 8  }
   0xc   :  { %25 = dma.hbm_to_vmem [thread:$0]  %s494_s1, 2048, %s20_s19, [#allocation3], %s436_s21, %s436_s21, %s437_s22  }
   0xd   :  { %s438_s25 = smov [#allocation4]  }
   0xe   :  { %s33_s26 = sshll.u32 %s438_s25, 4  ;;  %s34_s26 = int_to_ptr.vmem [resolvable:$true] %s33_s26 }
   0xf   :  { %s419_s27 = scalar_lea.vmem %s34_s26, 2048  ;;  %p424_p6 = scmp.lt.s32.totalorder %s34_s26, %s34_s26 }
  0x10   :  { %p420_p5 = scmp.ne.s32.totalorder %s34_s26, %s419_s27  ;;  %p425_p7 = scmp.lt.s32.totalorder %s419_s27, %s419_s27 }
  0x12   :  { %p426_p8 = por %p425_p7, %p424_p6 }
  0x14   :  { %p427_p9 = pnand %p426_p8, %p420_p5 }
  0x16   :  { %430 = shalt.err (!%p427_p9)
}
  0x17   :  { %39 = dma.hbm_to_vmem [thread:$0]  %s496_s3, 2048, %s34_s26, [#allocation5], %s436_s21, %s436_s21, %s437_s22  }
  0x18   :  { %431 = dma.done.wait [#allocation3], 2048  }
  0x19   :  { %432 = vsyncadd [#allocation3], 4294965248 }
  0x1a   :  { %433 = dma.done.wait [#allocation5], 2048  }
  0x1b   :  { %434 = vsyncadd [#allocation5], 4294965248  ;;  %v65_v0 = vld [vmem:[#allocation2 + $0x78] sm:$0xff]  ;;  %v64_v1 = vld [vmem:[#allocation2 + $0x70] sm:$0xff] }
  0x1c   :  { %317 = vmatprep.subr.mxu0 %v65_v0  ;;  %v63_v2 = vld [vmem:[#allocation2 + $0x68] sm:$0xff]  ;;  %v62_v3 = vld [vmem:[#allocation2 + $0x60] sm:$0xff]  ;;  %v61_v5 = vld [vmem:[#allocation2 + $0x58] sm:$0xff] }
  0x1d   :  { %318 = vmatpush3.msra.mxu0 %v65_v0  ;;  %v48_v4 = vld [vmem:[%s493_s0] sm:$0xff]  ;;  %v165_v6 = vld [vmem:[#allocation4 + $0x78] sm:$0xff]  ;;  %v164_v7 = vld [vmem:[#allocation4 + $0x70] sm:$0xff] }
  0x1e   :  { %319 = vmatprep.subr.mxu0 %v64_v1  ;;  %349 = vmatprep.mubr.f32.mxu0 %v48_v4  ;;  %v60_v8 = vld [vmem:[#allocation2 + $0x50] sm:$0xff]  ;;  %v163_v9 = vld [vmem:[#allocation4 + $0x68] sm:$0xff]  ;;  %v162_v11 = vld [vmem:[#allocation4 + $0x60] sm:$0xff] }
  0x1f   :  { %320 = vmatpush3.msra.mxu0 %v64_v1  ;;  %352 = vmatprep.subr.mxu1 %v165_v6  ;;  %v59_v10 = vld [vmem:[#allocation2 + $0x48] sm:$0xff]  ;;  %v58_v12 = vld [vmem:[#allocation2 + $0x40] sm:$0xff]  ;;  %v161_v13 = vld [vmem:[#allocation4 + $0x58] sm:$0xff] }
  0x20   :  { %321 = vmatprep.subr.mxu0 %v63_v2  ;;  %353 = vmatpush3.msra.mxu1 %v165_v6  ;;  %v57_v14 = vld [vmem:[#allocation2 + $0x38] sm:$0xff]  ;;  %v160_v15 = vld [vmem:[#allocation4 + $0x50] sm:$0xff]  ;;  %v159_v17 = vld [vmem:[#allocation4 + $0x48] sm:$0xff] }
  0x21   :  { %322 = vmatpush3.msra.mxu0 %v63_v2  ;;  %354 = vmatprep.subr.mxu1 %v164_v7  ;;  %v56_v16 = vld [vmem:[#allocation2 + $0x30] sm:$0xff]  ;;  %v55_v18 = vld [vmem:[#allocation2 + $0x28] sm:$0xff]  ;;  %v158_v19 = vld [vmem:[#allocation4 + $0x40] sm:$0xff] }
  0x22   :  { %323 = vmatprep.subr.mxu0 %v62_v3  ;;  %355 = vmatpush3.msra.mxu1 %v164_v7  ;;  %v54_v20 = vld [vmem:[#allocation2 + $0x20] sm:$0xff]  ;;  %v157_v21 = vld [vmem:[#allocation4 + $0x38] sm:$0xff]  ;;  %v156_v23 = vld [vmem:[#allocation4 + $0x30] sm:$0xff] }
  0x23   :  { %324 = vmatpush3.msra.mxu0 %v62_v3  ;;  %356 = vmatprep.subr.mxu1 %v163_v9  ;;  %v53_v22 = vld [vmem:[#allocation2 + $0x18] sm:$0xff]  ;;  %v52_v24 = vld [vmem:[#allocation2 + $0x10] sm:$0xff]  ;;  %v155_v25 = vld [vmem:[#allocation4 + $0x28] sm:$0xff] }
  0x24   :  { %325 = vmatprep.subr.mxu0 %v61_v5  ;;  %357 = vmatpush3.msra.mxu1 %v163_v9  ;;  %v51_v26 = vld [vmem:[#allocation2 + $0x8] sm:$0xff]  ;;  %v154_v27 = vld [vmem:[#allocation4 + $0x20] sm:$0xff]  ;;  %v153_v30 = vld [vmem:[#allocation4 + $0x18] sm:$0xff] }
  0x25   :  { %326 = vmatpush3.msra.mxu0 %v61_v5  ;;  %358 = vmatprep.subr.mxu1 %v162_v11  ;;  %v50_v28 = vld [vmem:[#allocation2] sm:$0xff]  ;;  %v49_v29 = vld [vmem:[%s493_s0 + $0x8] sm:$0xff]  ;;  %v152_v31 = vld [vmem:[#allocation4 + $0x10] sm:$0xff] }
  0x26   :  { %327 = vmatprep.subr.mxu0 %v60_v8  ;;  %359 = vmatpush3.msra.mxu1 %v162_v11  ;;  %v151_v32 = vld [vmem:[#allocation4 + $0x8] sm:$0xff]  ;;  %v150_v33 = vld [vmem:[#allocation4] sm:$0xff] }
  0x27   :  { %328 = vmatpush3.msra.mxu0 %v60_v8  ;;  %360 = vmatprep.subr.mxu1 %v161_v13  ;;  %v279_v34 = vld [vmem:[%s495_s2] ss:$0 sm:$0xff] }
  0x28   :  { %329 = vmatprep.subr.mxu0 %v59_v10  ;;  %361 = vmatpush3.msra.mxu1 %v161_v13  ;;  %v280_v41 = vld [vmem:[%s497_s4] ss:$0 sm:$0xff] }
  0x29   :  { %330 = vmatpush3.msra.mxu0 %v59_v10  ;;  %362 = vmatprep.subr.mxu1 %v160_v15 }
  0x2a   :  { %331 = vmatprep.subr.mxu0 %v58_v12  ;;  %363 = vmatpush3.msra.mxu1 %v160_v15 }
  0x2b   :  { %332 = vmatpush3.msra.mxu0 %v58_v12  ;;  %364 = vmatprep.subr.mxu1 %v159_v17 }
  0x2c   :  { %333 = vmatprep.subr.mxu0 %v57_v14  ;;  %365 = vmatpush3.msra.mxu1 %v159_v17 }
  0x2d   :  { %334 = vmatpush3.msra.mxu0 %v57_v14  ;;  %366 = vmatprep.subr.mxu1 %v158_v19 }
  0x2e   :  { %335 = vmatprep.subr.mxu0 %v56_v16  ;;  %367 = vmatpush3.msra.mxu1 %v158_v19 }
  0x2f   :  { %336 = vmatpush3.msra.mxu0 %v56_v16  ;;  %368 = vmatprep.subr.mxu1 %v157_v21 }
  0x30   :  { %337 = vmatprep.subr.mxu0 %v55_v18  ;;  %369 = vmatpush3.msra.mxu1 %v157_v21 }
  0x31   :  { %338 = vmatpush3.msra.mxu0 %v55_v18  ;;  %370 = vmatprep.subr.mxu1 %v156_v23 }
  0x32   :  { %339 = vmatprep.subr.mxu0 %v54_v20  ;;  %371 = vmatpush3.msra.mxu1 %v156_v23 }
  0x33   :  { %340 = vmatpush3.msra.mxu0 %v54_v20  ;;  %372 = vmatprep.subr.mxu1 %v155_v25 }
  0x34   :  { %341 = vmatprep.subr.mxu0 %v53_v22  ;;  %373 = vmatpush3.msra.mxu1 %v155_v25 }
  0x35   :  { %342 = vmatpush3.msra.mxu0 %v53_v22  ;;  %374 = vmatprep.subr.mxu1 %v154_v27 }
  0x36   :  { %343 = vmatprep.subr.mxu0 %v52_v24  ;;  %375 = vmatpush3.msra.mxu1 %v154_v27 }
  0x37   :  { %344 = vmatpush3.msra.mxu0 %v52_v24  ;;  %376 = vmatprep.subr.mxu1 %v153_v30 }
  0x38   :  { %345 = vmatprep.subr.mxu0 %v51_v26  ;;  %377 = vmatpush3.msra.mxu1 %v153_v30 }
  0x39   :  { %346 = vmatpush3.msra.mxu0 %v51_v26  ;;  %378 = vmatprep.subr.mxu1 %v152_v31 }
  0x3a   :  { %347 = vmatprep.subr.mxu0 %v50_v28  ;;  %379 = vmatpush3.msra.mxu1 %v152_v31 }
  0x3b   :  { %348 = vmatpush3.msra.mxu0 %v50_v28  ;;  %380 = vmatprep.subr.mxu1 %v151_v32 }
  0x3c   :  { %350 = vmatmul.mubr.f32.vlgmr.msra.gmra.mxu0 %v49_v29  ;;  %381 = vmatpush3.msra.mxu1 %v151_v32 }
  0x3d   :  { %382 = vmatprep.subr.mxu1 %v150_v33 }
  0x3e   :  { %383 = vmatpush3.msra.mxu1 %v150_v33 }
  0xfc   :  { %v351_v35 = vpop.f32.mrf.mxu0 }
  0xfd   :  { %v145_v36 = vadd.f32 %v351_v35, %v279_v34 }
  0xfe   :  { %v139_v37 = vpop.f32.mrf.mxu0 }
  0xff   :  { %v140_v38 = vadd.f32 %v279_v34, %v139_v37  ;;  %v149_v40 = vmax.f32 %v145_v36, 0.0 }
 0x101   :  { %v148_v39 = vmax.f32 %v140_v38, 0.0 }
 0x103   :  { %384 = vmatprep.mubr.f32.mxu1 %v148_v39 }
 0x104   :  { %385 = vmatmul.mubr.f32.vlgmr.msra.gmra.mxu1 %v149_v40 }
 0x1c4   :  { %v386_v42 = vpop.f32.mrf.mxu1 }
 0x1c5   :  { %v270_v43 = vadd.f32 %v386_v42, %v280_v41 }
 0x1c6   :  { %v232_v44 = vpop.f32.mrf.mxu1 }
 0x1c7   :  { %272 = vst [vmem:[%s498_s5 + $0x8] sm:$0xff] %v270_v43  ;;  %v269_v45 = vadd.f32 %v280_v41, %v232_v44 }
 0x1c9   :  { %271 = vst [vmem:[%s498_s5] sm:$0xff] %v269_v45 }
 0x1ca   :  { %277 = vsyncpa [#allocation3], 1 }
 0x1cb   :  { %278 = vsyncpa [#allocation5], 1 }

</bundles_post_ra>
